<compile_context>
chip_gen: v7x
topology: tpu7x:2x2x1
jax: 0.10.0
libtpu: 0.0.40
codegen_flags: <defaults>
</compile_context>

<pallas_src>
import functools

import jax
import jax.numpy as jnp
from jax.experimental import pallas as pl
from jax.experimental.pallas import tpu as pltpu


def _round_up(n, m):
    return ((n + m - 1) // m) * m


def _vmem_budget_bytes():
    """Streaming-buffer budget (2x in + 2x out + f32 temp), per grid step."""
    phys = 64 << 20  # conservative fallback (v7x physical VMEM per TC)
    try:
        info = pltpu.get_tpu_info()
        phys = int(getattr(info, "vmem_capacity_bytes", phys))
    except Exception:
        pass
    # ~24 MiB on 128 MiB parts (v5e/v6e), ~16 MiB on 64 MiB parts (v7x).
    return min(24 << 20, max(8 << 20, phys // 4))


def _pick_block_b(B, D, itemsize):
    """Batch tile: sublane-granular, VMEM-budgeted, >=~8 grid steps."""
    sub = max(8, 32 // itemsize)          # sublane packing granularity
    d_lanes = _round_up(D, 128)           # physical lane footprint of one row
    per_row_stream = d_lanes * itemsize * 4   # 2x double-buffered in + out
    per_row_temp = d_lanes * 4                # f32 working copy inside kernel
    per_row = per_row_stream + per_row_temp

    budget = _vmem_budget_bytes()
    bb = budget // max(per_row, 1)
    bb = max(sub, min(4096, bb))          # raised cap: skinny-D uses the budget
    # Guarantee several grid steps (megacore on v7x + double buffering).
    bb = min(bb, max(sub, _round_up(pl.cdiv(B, 8), sub)))
    bb = max(sub, (bb // sub) * sub)
    # Never allocate a tile taller than the (sublane-rounded) batch itself.
    bb = min(bb, _round_up(B, sub))
    return bb, per_row, d_lanes


def _rmsnorm_kernel(x_ref, w_ref, o_ref, *, d_model, inv_d, epsilon, mask_lanes):
    # x_ref: (block_b, D), w_ref: (1, D), o_ref: (block_b, D)
    x = x_ref[...]
    xf = x.astype(jnp.float32)
    sq = xf * xf
    if mask_lanes:
        # D % 128 != 0: make sure physically padded lanes never reach the
        # reduce (their contents are not guaranteed to be zero).
        lane = jax.lax.broadcasted_iota(jnp.int32, sq.shape, 1)
        sq = jnp.where(lane < d_model, sq, 0.0)
    ssq = jnp.sum(sq, axis=-1, keepdims=True)          # cross-lane reduce (XLU)
    inv_rms = jax.lax.rsqrt(ssq * inv_d + epsilon)     # EUP rsqrt, no divide
    w = w_ref[...]
    if x.dtype == jnp.float32:
        out = (xf * inv_rms) * w.astype(jnp.float32)
    else:
        # Reduction stayed in f32; apply the scale in the input dtype to halve
        # vreg/VMEM pressure (free: the kernel is HBM-bound).
        out = (x * inv_rms.astype(x.dtype)) * w.astype(x.dtype)
    o_ref[...] = out.astype(o_ref.dtype)


def rmsnorm(x, w, epsilon=1e-10, block_b=None):
    """x: (B, D) array, w: (D,) scale.  Returns w * x / rms(x) per row."""
    B, D = x.shape
    itemsize = jnp.dtype(x.dtype).itemsize
    sub = max(8, 32 // itemsize)

    auto_bb, per_row, d_lanes = _pick_block_b(B, D, itemsize)
    if block_b is None:
        block_b = auto_bb
    else:
        block_b = max(sub, _round_up(block_b, sub))
        block_b = min(block_b, _round_up(B, sub))

    grid = (pl.cdiv(B, block_b),)         # ragged last block: no HBM pad/slice
    w2 = w.reshape(1, D).astype(x.dtype)  # resident (1, D) lane-major weight

    kernel = functools.partial(
        _rmsnorm_kernel,
        d_model=D,
        inv_d=1.0 / D,
        epsilon=float(epsilon),
        mask_lanes=(D % 128 != 0),
    )

    # Explicit scoped-VMEM limit: tile buffers + f32 temp + weight + headroom.
    vmem_limit = int(block_b * per_row + d_lanes * itemsize * 2 + (8 << 20))
    vmem_limit = max(16 << 20, min(vmem_limit, 48 << 20))

    cost = pl.CostEstimate(
        flops=3 * B * D,
        transcendentals=B,
        bytes_accessed=2 * B * D * itemsize + D * itemsize,
    )

    out = pl.pallas_call(
        kernel,
        out_shape=jax.ShapeDtypeStruct((B, D), x.dtype),
        grid_spec=pl.GridSpec(
            grid=grid,
            in_specs=[
                pl.BlockSpec((block_b, D), lambda i: (i, 0)),
                pl.BlockSpec((1, D), lambda i: (0, 0)),   # DMA'd once, resident
            ],
            out_specs=pl.BlockSpec((block_b, D), lambda i: (i, 0)),
        ),
        compiler_params=pltpu.CompilerParams(
            # Batch axis is independent -> shards across both TCs on v7x.
            dimension_semantics=("parallel",),
            vmem_limit_bytes=vmem_limit,
        ),
        cost_estimate=cost,
    )(x, w2)
    return out


def _reference(x, w, epsilon):
    xf = x.astype(jnp.float32)
    rms = jnp.sqrt(jnp.mean(xf ** 2, axis=1, keepdims=True) + epsilon)
    return (w.astype(jnp.float32) * (xf / rms)).astype(x.dtype)


if __name__ == "__main__":
    key = jax.random.PRNGKey(0)
    epsilon = 1e-10

    # Test 1: module-sized toy shape (batch=8, d_model=32); ragged last dim
    # (D=32 < 128) handled with a full-D block + in-kernel lane mask.
    B, D = 8, 32
    x = jax.random.normal(key, (B, D), dtype=jnp.float32)
    w = jnp.ones((D,), dtype=jnp.float32)  # nn.Parameter(torch.ones(d_model))
    out = jax.block_until_ready(rmsnorm(x, w, epsilon=epsilon))
    ref = _reference(x, w, epsilon)
    assert out.shape == (B, D)
    assert jnp.allclose(out, ref, atol=1e-5, rtol=1e-5)

    # Test 2: multi-step grid (3 batch tiles), lane-dense D, non-unit weight.
    B2, D2 = 48, 128
    key2, key3 = jax.random.split(key)
    x2 = jax.random.normal(key2, (B2, D2), dtype=jnp.float32)
    w2 = 0.5 + jax.random.uniform(key3, (D2,), dtype=jnp.float32)
    out2 = jax.block_until_ready(rmsnorm(x2, w2, epsilon=epsilon, block_b=16))
    ref2 = _reference(x2, w2, epsilon)
    assert out2.shape == (B2, D2)
    assert jnp.allclose(out2, ref2, atol=1e-5, rtol=1e-5)

    # Test 3: B not a multiple of block_b -> ragged last batch block (no HBM
    # padding, partial-block masked writes).
    B3, D3 = 20, 256
    key4, key5 = jax.random.split(key2)
    x3 = jax.random.normal(key4, (B3, D3), dtype=jnp.float32)
    w3 = 0.5 + jax.random.uniform(key5, (D3,), dtype=jnp.float32)
    out3 = jax.block_until_ready(rmsnorm(x3, w3, epsilon=epsilon, block_b=8))
    ref3 = _reference(x3, w3, epsilon)
    assert out3.shape == (B3, D3)
    assert jnp.allclose(out3, ref3, atol=1e-5, rtol=1e-5)

    # Test 4: bf16 input (f32 reduce, bf16 scale), ragged D and ragged batch.
    B4, D4 = 24, 160
    key6, key7 = jax.random.split(key4)
    x4 = jax.random.normal(key6, (B4, D4), dtype=jnp.float32).astype(jnp.bfloat16)
    w4 = (0.5 + jax.random.uniform(key7, (D4,), dtype=jnp.float32)).astype(jnp.bfloat16)
    out4 = jax.block_until_ready(rmsnorm(x4, w4, epsilon=epsilon))
    ref4 = _reference(x4, w4, epsilon)
    assert out4.shape == (B4, D4)
    assert jnp.allclose(out4.astype(jnp.float32), ref4.astype(jnp.float32),
                        atol=1e-1, rtol=1e-1)

    print("KERNEL_OK")
</pallas_src>

<mosaic_0001>
module attributes {stable_mosaic.version = 11 : i64} {
  func.func @_rmsnorm_kernel(%arg0: i32, %arg1: memref<8x32xf32, #tpu.memory_space<vmem>>, %arg2: memref<1x32xf32, #tpu.memory_space<vmem>>, %arg3: memref<8x32xf32, #tpu.memory_space<vmem>>) attributes {dimension_semantics = [#tpu.dimension_semantics<parallel>], iteration_bounds = array<i64: 1>, scalar_prefetch = 0 : i64, scratch_operands = 0 : i64, tpu.core_type = #tpu.core_type<tc>, window_params = [{transform_indices = @transform_0, window_bounds = array<i64: 8, 32>}, {pipeline_mode = #tpu.pipeline_mode<synchronous>, transform_indices = @transform_1, window_bounds = array<i64: 1, 32>}, {transform_indices = @transform_2, window_bounds = array<i64: 8, 32>}]} {
    %c0 = arith.constant 0 : index
    %c0_0 = arith.constant 0 : index
    %0 = vector.load %arg1[%c0, %c0_0] : memref<8x32xf32, #tpu.memory_space<vmem>>, vector<8x32xf32>
    %1 = arith.mulf %0, %0 : vector<8x32xf32>
    %2 = tpu.iota {dimensions = array<i32: 1>} : vector<8x32xi32>
    %c32_i32 = arith.constant 32 : i32
    %3 = vector.broadcast %c32_i32 : i32 to vector<8x32xi32>
    %4 = arith.cmpi slt, %2, %3 : vector<8x32xi32>
    %cst = arith.constant 0.000000e+00 : f32
    %5 = vector.broadcast %cst : f32 to vector<8x32xf32>
    %6 = arith.select %4, %1, %5 : vector<8x32xi1>, vector<8x32xf32>
    %cst_1 = arith.constant dense<0.000000e+00> : vector<8xf32>
    %7 = vector.multi_reduction <add>, %6, %cst_1 [1] : vector<8x32xf32> to vector<8xf32>
    %8 = vector.shape_cast %7 : vector<8xf32> to vector<8x1xf32>
    %cst_2 = arith.constant 3.125000e-02 : f32
    %9 = vector.broadcast %cst_2 : f32 to vector<8x1xf32>
    %10 = arith.mulf %8, %9 : vector<8x1xf32>
    %cst_3 = arith.constant 1.000000e-10 : f32
    %11 = vector.broadcast %cst_3 : f32 to vector<8x1xf32>
    %12 = arith.addf %10, %11 : vector<8x1xf32>
    %13 = math.rsqrt %12 : vector<8x1xf32>
    %c0_4 = arith.constant 0 : index
    %c0_5 = arith.constant 0 : index
    %14 = vector.load %arg2[%c0_4, %c0_5] : memref<1x32xf32, #tpu.memory_space<vmem>>, vector<1x32xf32>
    %15 = vector.broadcast %13 : vector<8x1xf32> to vector<8x32xf32>
    %16 = arith.mulf %0, %15 : vector<8x32xf32>
    %17 = vector.broadcast %14 : vector<1x32xf32> to vector<8x32xf32>
    %18 = arith.mulf %16, %17 : vector<8x32xf32>
    %c0_6 = arith.constant 0 : index
    %c0_7 = arith.constant 0 : index
    %19 = vector.load %arg3[%c0_6, %c0_7] : memref<8x32xf32, #tpu.memory_space<vmem>>, vector<8x32xf32>
    tpu.vector_store %arg3[%c0_6, %c0_7], %18 {strides = array<i32>} : memref<8x32xf32, #tpu.memory_space<vmem>>, vector<8x32xf32>,
    return
  }
  func.func @transform_0(%arg0: i32) -> (i32, i32) {
    %c0_i32 = arith.constant 0 : i32
    %c0_i32_0 = arith.constant 0 : i32
    return %arg0, %c0_i32 : i32, i32
  }
  func.func @transform_1(%arg0: i32) -> (i32, i32) {
    %c0_i32 = arith.constant 0 : i32
    %c0_i32_0 = arith.constant 0 : i32
    %c0_i32_1 = arith.constant 0 : i32
    return %c0_i32, %c0_i32_0 : i32, i32
  }
  func.func @transform_2(%arg0: i32) -> (i32, i32) {
    %c0_i32 = arith.constant 0 : i32
    %c0_i32_0 = arith.constant 0 : i32
    return %arg0, %c0_i32 : i32, i32
  }
}

</mosaic_0001>

<bundles_post_ra>
// kernel: tpu_custom_call.1
= control target key start
LH: loop header
LB: loop body
LE: loop exit
PB: predicated region body
PF: predicated region fallthrough
CT: control target
= control target key end

     0   :  { %7 = vsyncpa [#allocation3], 0  ;;  %s159_s0 = inlined_call_operand.hbm [shape: f32[8,32], index: 0, kind: input, shape index: {}]   ;;  %s160_s1 = inlined_call_operand.vmem [shape: f32[1,32], index: 1, kind: input, shape index: {}]   ;;  %s161_s2 = inlined_call_operand.hbm [shape: f32[8,32], index: 2, kind: output, shape index: {}]  }
   0x1   :  { %8 = vsyncpa [#allocation4], 0  ;;  %s115_s9 = smov [#allocation2]   ;;  %s67_s13 = scalar_lea.hbm %s159_s0, 128 }
   0x2   :  { %s15_s10 = sshll.u32 %s115_s9, 4  ;;  %p68_p0 = scmp.ne.s32.totalorder %s159_s0, %s67_s13  ;;  %s16_s10 = int_to_ptr.vmem [resolvable:$true] %s15_s10 }
   0x3   :  { %p71_p1 = scmp.lt.u32.totalorder %s67_s13, %s159_s0 }
   0x5   :  { %p73_p2 = pnand %p71_p1, %p68_p0 }
   0x7   :  { %76 = shalt.err (!%p73_p2)
}
   0x8   :  { %s77_s18 = scalar_lea.vmem %s16_s10, 128  ;;  %p82_p4 = scmp.lt.s32.totalorder %s16_s10, %s16_s10 }
   0x9   :  { %p78_p3 = scmp.ne.s32.totalorder %s16_s10, %s77_s18  ;;  %p83_p5 = scmp.lt.s32.totalorder %s77_s18, %s77_s18 }
   0xb   :  { %p84_p6 = por %p83_p5, %p82_p4 }
   0xd   :  { %p85_p7 = pnand %p84_p6, %p78_p3 }
   0xf   :  { %88 = shalt.err (!%p85_p7)
}
  0x10   :  { %18 = dma.hbm_to_vmem [thread:$0]  %s159_s0, 128, %s16_s10, [#allocation3]  }
  0x11   :  { %111 = dma.done.wait [#allocation3], 128  }
  0x12   :  { %112 = vsyncadd [#allocation3], 4294967168  ;;  %v26_v0 = vlaneseq  ;;  %v24_v2 = vld [vmem:[#allocation2] sm:$0xff]  ;;  %vm30_vm1 = vcmask 261120   ;;  %s116_s0 = smov [#allocation5]  }
  0x13   :  { %v25_v3 = vmul.f32 %v24_v2, %v24_v2  ;;  %v62_v10 = vld [vmem:[%s160_s1] ss:$0 sm:$0xff]  ;;  %s53_s23 = sshll.u32 %s116_s0, 4  ;;  %s54_s23 = int_to_ptr.vmem [resolvable:$true] %s53_s23 }
  0x14   :  { %v27_v1 = vand.u32 127, %v26_v0  ;;  %s89_s24 = scalar_lea.vmem %s54_s23, 128  ;;  %p94_p9 = scmp.lt.s32.totalorder %s54_s23, %s54_s23 }
  0x15   :  { %p90_p8 = scmp.ne.s32.totalorder %s54_s23, %s89_s24  ;;  %p95_p10 = scmp.lt.s32.totalorder %s89_s24, %s89_s24 }
  0x16   :  { %vm28_vm0 = vcmp.lt.s32.totalorder %v27_v1, 32 }
  0x17   :  { %v29_v4 = vsel %vm28_vm0, %v25_v3, 0.0  ;;  %p96_p11 = por %p95_p10, %p94_p9 }
  0x18   :  { %v31_v5 = vsel %vm30_vm1, %v29_v4, 0.0 }
  0x19   :  { %32 = vadd.xlane.f32.xlu0 %v31_v5  ;;  %p97_p12 = pnand %p96_p11, %p90_p8 }
  0xa6   :  { %v33_v6 = vpop.xlane.xlu0 %32 }
  0xa7   :  { %v34_v7 = vmul.f32 0.03125, %v33_v6 }
  0xa9   :  { %v35_v8 = vadd.f32 1e-10, %v34_v7 }
  0xab   :  { %65 = vrsqrt.f32 %v35_v8 }
  0xb5   :  { %v66_v9 = vpop.eup %65 }
  0xb6   :  { %v38_v11 = vmul.f32 %v66_v9, %v24_v2 }
  0xb8   :  { %v45_v12 = vmul.f32 %v62_v10, %v38_v11 }
  0xba   :  { %46 = vst.msk [vmem:[#allocation5] sm:$0xff] %vm30_vm1, %v45_v12 }
  0xbb   :  { %100 = shalt.err (!%p97_p12)
}
  0xbc   :  { %s101_s27 = scalar_lea.hbm %s161_s2, 128 }
  0xbd   :  { %p102_p13 = scmp.ne.s32.totalorder %s161_s2, %s101_s27  ;;  %p105_p0 = scmp.lt.u32.totalorder %s101_s27, %s161_s2 }
  0xbf   :  { %p107_p1 = pnand %p105_p0, %p102_p13 }
  0xc1   :  { %110 = shalt.err (!%p107_p1)
}
  0xc2   :  { %56 = dma.vmem_to_hbm [thread:$0]  %s54_s23, 128, %s161_s2, [#allocation4]  }
  0xc3   :  { %113 = dma.done.wait [#allocation4], 128  }
  0xc4   :  { %114 = vsyncadd [#allocation4], 4294967168 }
  0xc5   :  { %60 = vsyncpa [#allocation3], 1 }
  0xc6   :  { %61 = vsyncpa [#allocation4], 1 }

</bundles_post_ra>
